<compile_context>
chip_gen: v5e
topology: v5e:2x2
jax: 0.10.0
libtpu: 0.0.40
codegen_flags: <defaults>
</compile_context>

<pallas_src>
import functools

import jax
import jax.numpy as jnp
from jax import lax
from jax.experimental import pallas as pl
from jax.experimental.pallas import tpu as pltpu


def _round_up(x, m):
    return (x + m - 1) // m * m


def _vmem_capacity_bytes():
    try:
        return int(pltpu.get_tpu_info().vmem_capacity_bytes)
    except Exception:
        return 64 << 20  # conservative (v7x per-TensorCore)


def _mlp_head_kernel(x_ref, w1_ref, b1_ref, w2_ref, b2_ref, o_ref, h_acc_ref, *,
                     eps, approx):
    # x_ref : [TM, TK]            row tile of the batch, K-slab of dim_in
    # w1_ref: [TK, dim_h_p]       ([in, out] layout -> no transpose on the MXU)
    # b1_ref: [1, dim_h_p]
    # w2_ref: [dim_h_p, dim_feat_p]
    # b2_ref: [1, dim_feat_p]
    # o_ref : [TM, dim_feat_p]
    # h_acc_ref: [TM, dim_h_p] f32 scratch (first-matmul accumulator)
    k = pl.program_id(1)

    @pl.when(k == 0)
    def _init():
        h_acc_ref[...] = jnp.zeros_like(h_acc_ref)

    # Linear 1 partial product for this K slab (MXU, f32 accumulate).
    h_acc_ref[...] += lax.dot_general(
        x_ref[...], w1_ref[...], (((1,), (0,)), ((), ())),
        preferred_element_type=jnp.float32)

    @pl.when(k == pl.num_programs(1) - 1)
    def _finalize():
        h = jnp.maximum(h_acc_ref[...] + b1_ref[...].astype(jnp.float32), 0.0)
        # Cast back to the weight dtype so bf16 params hit the bf16 MXU fast
        # path (accumulation stays f32).  NOTE: with bf16 params this
        # intentionally diverges from a pure-fp32 reference at bf16 precision.
        y = lax.dot_general(h.astype(w2_ref.dtype), w2_ref[...],
                            (((1,), (0,)), ((), ())),
                            preferred_element_type=jnp.float32)
        y = y + b2_ref[...].astype(jnp.float32)
        # F.normalize(dim=1, p=2): y / max(||y||_2, eps) per row.  Reciprocal
        # runs on the EUP; approx=True uses the cheap approximate path.
        norm = jnp.sqrt(jnp.sum(y * y, axis=1, keepdims=True))
        inv = pl.reciprocal(jnp.maximum(norm, eps), approx=approx)
        o_ref[...] = (y * inv).astype(o_ref.dtype)


def mlp_head_forward(x, w1, b1, w2, b2, *, eps=1e-12, block_rows=None,
                     k_block=None, compute_dtype=None, approx_reciprocal=False):
    """Fused MLPHead forward.

    x : [B, dim_in]
    w1: [dim_in, dim_h]   (transposed vs torch.nn.Linear's [out, in] layout)
    b1: [dim_h]
    w2: [dim_h, dim_feat]
    b2: [dim_feat]
    returns L2-normalized features [B, dim_feat] in x's original dtype.
    """
    B, dim_in = x.shape
    dim_h = w1.shape[1]
    dim_feat = w2.shape[1]
    assert w1.shape == (dim_in, dim_h)
    assert b1.shape == (dim_h,)
    assert w2.shape == (dim_h, dim_feat)
    assert b2.shape == (dim_feat,)

    out_dtype = x.dtype
    if compute_dtype is not None:      # e.g. jnp.bfloat16 -> MXU fast path
        x = x.astype(compute_dtype)
        w1 = w1.astype(compute_dtype)
        w2 = w2.astype(compute_dtype)

    # --- lane-pad hidden/feature dims to multiples of 128 (zero columns/rows
    # contribute nothing and the padded output columns are exactly zero, so
    # the per-row L2 norm is unaffected; output columns sliced afterwards).
    dim_h_p = _round_up(dim_h, 128)
    dim_feat_p = _round_up(dim_feat, 128)
    if dim_h_p != dim_h:
        w1 = jnp.pad(w1, ((0, 0), (0, dim_h_p - dim_h)))
        b1 = jnp.pad(b1, ((0, dim_h_p - dim_h),))
        w2 = jnp.pad(w2, ((0, dim_h_p - dim_h), (0, 0)))
    if dim_feat_p != dim_feat:
        w2 = jnp.pad(w2, ((0, 0), (0, dim_feat_p - dim_feat)))
        b2 = jnp.pad(b2, ((0, dim_feat_p - dim_feat),))

    # --- generation-aware VMEM budget.
    cap = _vmem_capacity_bytes()
    budget = max(cap - (16 << 20), 24 << 20)

    # --- choose the K (dim_in) tile: fully resident w1 when it fits, else a
    # 128-multiple K slab on a trailing "arbitrary" reduction axis.
    w1_item = jnp.dtype(w1.dtype).itemsize
    other_weight_bytes = (dim_h_p * jnp.dtype(b1.dtype).itemsize
                          + dim_h_p * dim_feat_p * jnp.dtype(w2.dtype).itemsize
                          + dim_feat_p * jnp.dtype(b2.dtype).itemsize)
    w1_full_bytes = dim_in * dim_h_p * w1_item
    if k_block is not None:
        tk = max(128, _round_up(int(k_block), 128))
    elif w1_full_bytes + other_weight_bytes <= (2 * budget) // 3:
        tk = dim_in
    else:
        per_k_bytes = 2 * dim_h_p * w1_item            # double-buffered w1 slab
        avail = max(budget // 2 - other_weight_bytes, per_k_bytes * 128)
        tk = max(128, (avail // per_k_bytes) // 128 * 128)

    if k_block is None and tk >= dim_in:
        tk, nk = dim_in, 1
    else:
        dim_in_p = _round_up(dim_in, tk)
        nk = dim_in_p // tk
        if dim_in_p != dim_in:  # zero-pad K: contributes 0 to the reduction
            x = jnp.pad(x, ((0, 0), (0, dim_in_p - dim_in)))
            w1 = jnp.pad(w1, ((0, dim_in_p - dim_in), (0, 0)))

    # --- choose the row tile from the remaining VMEM budget.
    x_item = jnp.dtype(x.dtype).itemsize
    out_item = jnp.dtype(out_dtype).itemsize
    w1_bufs = 1 if nk == 1 else 2
    weight_bytes = w1_bufs * tk * dim_h_p * w1_item + other_weight_bytes

    def tile_bytes(tm_):
        return (2 * tm_ * tk * x_item                  # pipelined x row tiles
                + 2 * tm_ * dim_feat_p * out_item      # pipelined output tiles
                + tm_ * dim_h_p * 4                    # f32 h accumulator scratch
                + tm_ * (dim_h_p + dim_feat_p) * 4)    # live f32 temporaries

    tm_max = _round_up(int(block_rows), 8) if block_rows is not None else 512
    tm = min(tm_max, _round_up(B, 8))
    if tm >= 128:
        tm = (tm // 128) * 128                          # keep the MXU M-dim full
    while tm > 8 and weight_bytes + tile_bytes(tm) > budget:
        tm = max(8, ((tm // 2) // 8) * 8)
    # Prefer >= 2 row blocks so the "parallel" axis shards across both v7x
    # TensorCores (near-free elsewhere).
    if B >= 16 and pl.cdiv(B, tm) < 2:
        tm = _round_up(pl.cdiv(B, 2), 8)
    n_rows = pl.cdiv(B, tm)

    need = weight_bytes + tile_bytes(tm)
    vmem_limit = int(min(max(need + (4 << 20), 16 << 20), cap - (8 << 20)))

    b1_2d = b1.reshape(1, dim_h_p)
    b2_2d = b2.reshape(1, dim_feat_p)

    kernel = functools.partial(_mlp_head_kernel, eps=float(eps),
                               approx=bool(approx_reciprocal))

    def _build_and_run(single_buffer_weights):
        const_mode = pl.Buffered(1) if single_buffer_weights else None
        w1_mode = const_mode if nk == 1 else None

        def spec(shape, imap, mode=None):
            if mode is None:
                return pl.BlockSpec(shape, imap)
            return pl.BlockSpec(shape, imap, pipeline_mode=mode)

        return pl.pallas_call(
            kernel,
            out_shape=jax.ShapeDtypeStruct((B, dim_feat_p), out_dtype),
            grid=(n_rows, nk),
            in_specs=[
                spec((tm, tk), lambda i, k: (i, k)),
                spec((tk, dim_h_p), lambda i, k: (k, 0), w1_mode),
                spec((1, dim_h_p), lambda i, k: (0, 0), const_mode),
                spec((dim_h_p, dim_feat_p), lambda i, k: (0, 0), const_mode),
                spec((1, dim_feat_p), lambda i, k: (0, 0), const_mode),
            ],
            out_specs=spec((tm, dim_feat_p), lambda i, k: (i, 0)),
            scratch_shapes=[pltpu.VMEM((tm, dim_h_p), jnp.float32)],
            compiler_params=pltpu.CompilerParams(
                dimension_semantics=("parallel", "arbitrary"),
                vmem_limit_bytes=vmem_limit,
            ),
        )(x, w1, b1_2d, w2, b2_2d)

    try:
        out = _build_and_run(True)
    except Exception:
        # pipeline_mode=pl.Buffered(1) not supported by this Pallas build ->
        # fall back to default double-buffering (correctness unaffected).
        out = _build_and_run(False)

    if dim_feat_p != dim_feat:
        out = out[:, :dim_feat]
    return out


def _mlp_head_ref(x, w1, b1, w2, b2, eps=1e-12):
    """Pure-JAX reference (direct transcription of the PyTorch forward)."""
    h = jnp.maximum(x @ w1 + b1, 0.0)
    y = h @ w2 + b2
    n = jnp.sqrt(jnp.sum(y * y, axis=1, keepdims=True))
    return y / jnp.maximum(n, eps)


if __name__ == "__main__":
    key = jax.random.PRNGKey(0)

    def make_params(k, dim_in, dim_h, dim_feat):
        k1, kb1, k2, kb2 = jax.random.split(k, 4)
        lim1 = 1.0 / (dim_in ** 0.5)
        lim2 = 1.0 / (dim_h ** 0.5)
        w1 = jax.random.uniform(k1, (dim_in, dim_h), jnp.float32, -lim1, lim1)
        b1 = jax.random.uniform(kb1, (dim_h,), jnp.float32, -lim1, lim1)
        w2 = jax.random.uniform(k2, (dim_h, dim_feat), jnp.float32, -lim2, lim2)
        b2 = jax.random.uniform(kb2, (dim_feat,), jnp.float32, -lim2, lim2)
        return w1, b1, w2, b2

    # 1) Small head: fully-resident weights (nk == 1), strict fp32 check.
    kx, kp, key = jax.random.split(key, 3)
    B, dim_in, dim_h, dim_feat = 8, 32, 32, 16
    x = jax.random.normal(kx, (B, dim_in), jnp.float32)
    w1, b1, w2, b2 = make_params(kp, dim_in, dim_h, dim_feat)
    out = jax.block_until_ready(mlp_head_forward(x, w1, b1, w2, b2))
    ref = _mlp_head_ref(x, w1, b1, w2, b2)
    assert out.shape == (B, dim_feat)
    assert jnp.allclose(out, ref, rtol=1e-5, atol=1e-5)

    # 2) Ragged batch + forced K-tiling (nk=2) + non-128 hidden/feature dims.
    kx, kp, key = jax.random.split(key, 3)
    B, dim_in, dim_h, dim_feat = 24, 256, 96, 48
    x = jax.random.normal(kx, (B, dim_in), jnp.float32)
    w1, b1, w2, b2 = make_params(kp, dim_in, dim_h, dim_feat)
    out = jax.block_until_ready(mlp_head_forward(x, w1, b1, w2, b2, k_block=128))
    ref = _mlp_head_ref(x, w1, b1, w2, b2)
    assert out.shape == (B, dim_feat)
    assert jnp.allclose(out, ref, rtol=1e-4, atol=1e-4)

    # 3) bf16 MXU fast path (f32 accumulate) + approx reciprocal epilogue.
    out_bf16 = jax.block_until_ready(
        mlp_head_forward(x, w1, b1, w2, b2, compute_dtype=jnp.bfloat16,
                         approx_reciprocal=True))
    assert out_bf16.shape == (B, dim_feat)
    assert jnp.allclose(out_bf16, ref, rtol=5e-2, atol=5e-2)

    print("KERNEL_OK")
</pallas_src>

<mosaic_0001>
module attributes {stable_mosaic.version = 11 : i64} {
  func.func @_mlp_head_kernel(%arg0: i32, %arg1: i32, %arg2: memref<8x32xf32, #tpu.memory_space<vmem>>, %arg3: memref<32x128xf32, #tpu.memory_space<vmem>>, %arg4: memref<1x128xf32, #tpu.memory_space<vmem>>, %arg5: memref<128x128xf32, #tpu.memory_space<vmem>>, %arg6: memref<1x128xf32, #tpu.memory_space<vmem>>, %arg7: memref<8x128xf32, #tpu.memory_space<vmem>>, %arg8: memref<8x128xf32, #tpu.memory_space<vmem>>) attributes {dimension_semantics = [#tpu.dimension_semantics<parallel>, #tpu.dimension_semantics<arbitrary>], iteration_bounds = array<i64: 1, 1>, scalar_prefetch = 0 : i64, scratch_operands = 1 : i64, tpu.core_type = #tpu.core_type<tc>, window_params = [{transform_indices = @transform_0, window_bounds = array<i64: 8, 32>}, {pipeline_mode = #tpu.pipeline_mode<synchronous>, transform_indices = @transform_1, window_bounds = array<i64: 32, 128>}, {pipeline_mode = #tpu.pipeline_mode<synchronous>, transform_indices = @transform_2, window_bounds = array<i64: 1, 128>}, {pipeline_mode = #tpu.pipeline_mode<synchronous>, transform_indices = @transform_3, window_bounds = array<i64: 128, 128>}, {pipeline_mode = #tpu.pipeline_mode<synchronous>, transform_indices = @transform_4, window_bounds = array<i64: 1, 128>}, {transform_indices = @transform_5, window_bounds = array<i64: 8, 128>}]} {
    %c0_i32 = arith.constant 0 : i32
    %0 = arith.cmpi eq, %arg1, %c0_i32 : i32
    %1 = arith.extui %0 : i1 to i32
    %c0_i32_0 = arith.constant 0 : i32
    %2 = arith.cmpi ne, %1, %c0_i32_0 : i32
    scf.if %2 {
      %cst_10 = arith.constant 0.000000e+00 : f32
      %12 = vector.broadcast %cst_10 : f32 to vector<8x128xf32>
      %c0_11 = arith.constant 0 : index
      %c0_12 = arith.constant 0 : index
      %13 = vector.load %arg8[%c0_11, %c0_12] : memref<8x128xf32, #tpu.memory_space<vmem>>, vector<8x128xf32>
      tpu.vector_store %arg8[%c0_11, %c0_12], %12 {strides = array<i32>} : memref<8x128xf32, #tpu.memory_space<vmem>>, vector<8x128xf32>,
    } else {
    }
    %c0 = arith.constant 0 : index
    %c0_1 = arith.constant 0 : index
    %3 = vector.load %arg8[%c0, %c0_1] : memref<8x128xf32, #tpu.memory_space<vmem>>, vector<8x128xf32>
    %c0_2 = arith.constant 0 : index
    %c0_3 = arith.constant 0 : index
    %4 = vector.load %arg2[%c0_2, %c0_3] : memref<8x32xf32, #tpu.memory_space<vmem>>, vector<8x32xf32>
    %c0_4 = arith.constant 0 : index
    %c0_5 = arith.constant 0 : index
    %5 = vector.load %arg3[%c0_4, %c0_5] : memref<32x128xf32, #tpu.memory_space<vmem>>, vector<32x128xf32>
    %cst = arith.constant dense<0.000000e+00> : vector<8x128xf32>
    %6 = tpu.matmul %4, %5, %cst {dimension_numbers = #tpu.dot_dimension_numbers<[1], [0], [0], [1], [0, 0, 1, 1], [], []>} : vector<8x32xf32>, vector<32x128xf32>, vector<8x128xf32> -> vector<8x128xf32>
    %7 = arith.addf %3, %6 : vector<8x128xf32>
    %c0_6 = arith.constant 0 : index
    %c0_7 = arith.constant 0 : index
    %8 = vector.load %arg8[%c0_6, %c0_7] : memref<8x128xf32, #tpu.memory_space<vmem>>, vector<8x128xf32>
    tpu.vector_store %arg8[%c0_6, %c0_7], %7 {strides = array<i32>} : memref<8x128xf32, #tpu.memory_space<vmem>>, vector<8x128xf32>,
    %c0_i32_8 = arith.constant 0 : i32
    %9 = arith.cmpi eq, %arg1, %c0_i32_8 : i32
    %10 = arith.extui %9 : i1 to i32
    %c0_i32_9 = arith.constant 0 : i32
    %11 = arith.cmpi ne, %10, %c0_i32_9 : i32
    scf.if %11 {
      %c0_10 = arith.constant 0 : index
      %c0_11 = arith.constant 0 : index
      %12 = vector.load %arg8[%c0_10, %c0_11] : memref<8x128xf32, #tpu.memory_space<vmem>>, vector<8x128xf32>
      %c0_12 = arith.constant 0 : index
      %c0_13 = arith.constant 0 : index
      %13 = vector.load %arg4[%c0_12, %c0_13] : memref<1x128xf32, #tpu.memory_space<vmem>>, vector<1x128xf32>
      %14 = vector.broadcast %13 : vector<1x128xf32> to vector<8x128xf32>
      %15 = arith.addf %12, %14 : vector<8x128xf32>
      %cst_14 = arith.constant 0.000000e+00 : f32
      %16 = vector.broadcast %cst_14 : f32 to vector<8x128xf32>
      %17 = arith.maximumf %15, %16 : vector<8x128xf32>
      %c0_15 = arith.constant 0 : index
      %c0_16 = arith.constant 0 : index
      %18 = vector.load %arg5[%c0_15, %c0_16] : memref<128x128xf32, #tpu.memory_space<vmem>>, vector<128x128xf32>
      %cst_17 = arith.constant dense<0.000000e+00> : vector<8x128xf32>
      %19 = tpu.matmul %17, %18, %cst_17 {dimension_numbers = #tpu.dot_dimension_numbers<[1], [0], [0], [1], [0, 0, 1, 1], [], []>} : vector<8x128xf32>, vector<128x128xf32>, vector<8x128xf32> -> vector<8x128xf32>
      %c0_18 = arith.constant 0 : index
      %c0_19 = arith.constant 0 : index
      %20 = vector.load %arg6[%c0_18, %c0_19] : memref<1x128xf32, #tpu.memory_space<vmem>>, vector<1x128xf32>
      %21 = vector.broadcast %20 : vector<1x128xf32> to vector<8x128xf32>
      %22 = arith.addf %19, %21 : vector<8x128xf32>
      %23 = arith.mulf %22, %22 : vector<8x128xf32>
      %cst_20 = arith.constant dense<0.000000e+00> : vector<8xf32>
      %24 = vector.multi_reduction <add>, %23, %cst_20 [1] : vector<8x128xf32> to vector<8xf32>
      %25 = vector.shape_cast %24 : vector<8xf32> to vector<8x1xf32>
      %26 = math.sqrt %25 : vector<8x1xf32>
      %cst_21 = arith.constant 9.99999996E-13 : f32
      %27 = vector.broadcast %cst_21 : f32 to vector<8x1xf32>
      %28 = arith.maximumf %26, %27 : vector<8x1xf32>
      %29 = tpu.reciprocal %28 : vector<8x1xf32> -> vector<8x1xf32>
      %30 = vector.broadcast %29 : vector<8x1xf32> to vector<8x128xf32>
      %31 = arith.mulf %22, %30 : vector<8x128xf32>
      %c0_22 = arith.constant 0 : index
      %c0_23 = arith.constant 0 : index
      %32 = vector.load %arg7[%c0_22, %c0_23] : memref<8x128xf32, #tpu.memory_space<vmem>>, vector<8x128xf32>
      tpu.vector_store %arg7[%c0_22, %c0_23], %31 {strides = array<i32>} : memref<8x128xf32, #tpu.memory_space<vmem>>, vector<8x128xf32>,
    } else {
    }
    return
  }
  func.func @transform_0(%arg0: i32, %arg1: i32) -> (i32, i32) {
    %c0_i32 = arith.constant 0 : i32
    return %arg0, %arg1 : i32, i32
  }
  func.func @transform_1(%arg0: i32, %arg1: i32) -> (i32, i32) {
    %c0_i32 = arith.constant 0 : i32
    %c0_i32_0 = arith.constant 0 : i32
    return %arg1, %c0_i32 : i32, i32
  }
  func.func @transform_2(%arg0: i32, %arg1: i32) -> (i32, i32) {
    %c0_i32 = arith.constant 0 : i32
    %c0_i32_0 = arith.constant 0 : i32
    %c0_i32_1 = arith.constant 0 : i32
    return %c0_i32, %c0_i32_0 : i32, i32
  }
  func.func @transform_3(%arg0: i32, %arg1: i32) -> (i32, i32) {
    %c0_i32 = arith.constant 0 : i32
    %c0_i32_0 = arith.constant 0 : i32
    %c0_i32_1 = arith.constant 0 : i32
    return %c0_i32, %c0_i32_0 : i32, i32
  }
  func.func @transform_4(%arg0: i32, %arg1: i32) -> (i32, i32) {
    %c0_i32 = arith.constant 0 : i32
    %c0_i32_0 = arith.constant 0 : i32
    %c0_i32_1 = arith.constant 0 : i32
    return %c0_i32, %c0_i32_0 : i32, i32
  }
  func.func @transform_5(%arg0: i32, %arg1: i32) -> (i32, i32) {
    %c0_i32 = arith.constant 0 : i32
    %c0_i32_0 = arith.constant 0 : i32
    return %arg0, %c0_i32 : i32, i32
  }
}

module attributes {stable_mosaic.version = 11 : i64} {
  func.func @_mlp_head_kernel(%arg0: i32, %arg1: i32, %arg2: memref<8x32xf32, #tpu.memory_space<vmem>>, %arg3: memref<32x128xf32, #tpu.memory_space<vmem>>, %arg4: memref<1x128xf32, #tpu.memory_space<vmem>>, %arg5: memref<128x128xf32, #tpu.memory_space<vmem>>, %arg6: memref<1x128xf32, #tpu.memory_space<vmem>>, %arg7: memref<8x128xf32, #tpu.memory_space<vmem>>, %arg8: memref<8x128xf32, #tpu.memory_space<vmem>>) attributes {dimension_semantics = [#tpu.dimension_semantics<parallel>, #tpu.dimension_semantics<arbitrary>], iteration_bounds = array<i64: 1, 1>, scalar_prefetch = 0 : i64, scratch_operands = 1 : i64, tpu.core_type = #tpu.core_type<tc>, window_params = [{transform_indices = @transform_0, window_bounds = array<i64: 8, 32>}, {transform_indices = @transform_1, window_bounds = array<i64: 32, 128>}, {pipeline_mode = #tpu.pipeline_mode<synchronous>, transform_indices = @transform_2, window_bounds = array<i64: 1, 128>}, {pipeline_mode = #tpu.pipeline_mode<synchronous>, transform_indices = @transform_3, window_bounds = array<i64: 128, 128>}, {pipeline_mode = #tpu.pipeline_mode<synchronous>, transform_indices = @transform_4, window_bounds = array<i64: 1, 128>}, {transform_indices = @transform_5, window_bounds = array<i64: 8, 128>}]} {
    %c0_i32 = arith.constant 0 : i32
    %0 = arith.cmpi eq, %arg1, %c0_i32 : i32
    %1 = arith.extui %0 : i1 to i32
    %c0_i32_0 = arith.constant 0 : i32
    %2 = arith.cmpi ne, %1, %c0_i32_0 : i32
    scf.if %2 {
      %cst_10 = arith.constant 0.000000e+00 : f32
      %12 = vector.broadcast %cst_10 : f32 to vector<8x128xf32>
      %c0_11 = arith.constant 0 : index
      %c0_12 = arith.constant 0 : index
      %13 = vector.load %arg8[%c0_11, %c0_12] : memref<8x128xf32, #tpu.memory_space<vmem>>, vector<8x128xf32>
      tpu.vector_store %arg8[%c0_11, %c0_12], %12 {strides = array<i32>} : memref<8x128xf32, #tpu.memory_space<vmem>>, vector<8x128xf32>,
    } else {
    }
    %c0 = arith.constant 0 : index
    %c0_1 = arith.constant 0 : index
    %3 = vector.load %arg8[%c0, %c0_1] : memref<8x128xf32, #tpu.memory_space<vmem>>, vector<8x128xf32>
    %c0_2 = arith.constant 0 : index
    %c0_3 = arith.constant 0 : index
    %4 = vector.load %arg2[%c0_2, %c0_3] : memref<8x32xf32, #tpu.memory_space<vmem>>, vector<8x32xf32>
    %c0_4 = arith.constant 0 : index
    %c0_5 = arith.constant 0 : index
    %5 = vector.load %arg3[%c0_4, %c0_5] : memref<32x128xf32, #tpu.memory_space<vmem>>, vector<32x128xf32>
    %cst = arith.constant dense<0.000000e+00> : vector<8x128xf32>
    %6 = tpu.matmul %4, %5, %cst {dimension_numbers = #tpu.dot_dimension_numbers<[1], [0], [0], [1], [0, 0, 1, 1], [], []>} : vector<8x32xf32>, vector<32x128xf32>, vector<8x128xf32> -> vector<8x128xf32>
    %7 = arith.addf %3, %6 : vector<8x128xf32>
    %c0_6 = arith.constant 0 : index
    %c0_7 = arith.constant 0 : index
    %8 = vector.load %arg8[%c0_6, %c0_7] : memref<8x128xf32, #tpu.memory_space<vmem>>, vector<8x128xf32>
    tpu.vector_store %arg8[%c0_6, %c0_7], %7 {strides = array<i32>} : memref<8x128xf32, #tpu.memory_space<vmem>>, vector<8x128xf32>,
    %c0_i32_8 = arith.constant 0 : i32
    %9 = arith.cmpi eq, %arg1, %c0_i32_8 : i32
    %10 = arith.extui %9 : i1 to i32
    %c0_i32_9 = arith.constant 0 : i32
    %11 = arith.cmpi ne, %10, %c0_i32_9 : i32
    scf.if %11 {
      %c0_10 = arith.constant 0 : index
      %c0_11 = arith.constant 0 : index
      %12 = vector.load %arg8[%c0_10, %c0_11] : memref<8x128xf32, #tpu.memory_space<vmem>>, vector<8x128xf32>
      %c0_12 = arith.constant 0 : index
      %c0_13 = arith.constant 0 : index
      %13 = vector.load %arg4[%c0_12, %c0_13] : memref<1x128xf32, #tpu.memory_space<vmem>>, vector<1x128xf32>
      %14 = vector.broadcast %13 : vector<1x128xf32> to vector<8x128xf32>
      %15 = arith.addf %12, %14 : vector<8x128xf32>
      %cst_14 = arith.constant 0.000000e+00 : f32
      %16 = vector.broadcast %cst_14 : f32 to vector<8x128xf32>
      %17 = arith.maximumf %15, %16 : vector<8x128xf32>
      %c0_15 = arith.constant 0 : index
      %c0_16 = arith.constant 0 : index
      %18 = vector.load %arg5[%c0_15, %c0_16] : memref<128x128xf32, #tpu.memory_space<vmem>>, vector<128x128xf32>
      %cst_17 = arith.constant dense<0.000000e+00> : vector<8x128xf32>
      %19 = tpu.matmul %17, %18, %cst_17 {dimension_numbers = #tpu.dot_dimension_numbers<[1], [0], [0], [1], [0, 0, 1, 1], [], []>} : vector<8x128xf32>, vector<128x128xf32>, vector<8x128xf32> -> vector<8x128xf32>
      %c0_18 = arith.constant 0 : index
      %c0_19 = arith.constant 0 : index
      %20 = vector.load %arg6[%c0_18, %c0_19] : memref<1x128xf32, #tpu.memory_space<vmem>>, vector<1x128xf32>
      %21 = vector.broadcast %20 : vector<1x128xf32> to vector<8x128xf32>
      %22 = arith.addf %19, %21 : vector<8x128xf32>
      %23 = arith.mulf %22, %22 : vector<8x128xf32>
      %cst_20 = arith.constant dense<0.000000e+00> : vector<8xf32>
      %24 = vector.multi_reduction <add>, %23, %cst_20 [1] : vector<8x128xf32> to vector<8xf32>
      %25 = vector.shape_cast %24 : vector<8xf32> to vector<8x1xf32>
      %26 = math.sqrt %25 : vector<8x1xf32>
      %cst_21 = arith.constant 9.99999996E-13 : f32
      %27 = vector.broadcast %cst_21 : f32 to vector<8x1xf32>
      %28 = arith.maximumf %26, %27 : vector<8x1xf32>
      %29 = tpu.reciprocal %28 : vector<8x1xf32> -> vector<8x1xf32>
      %30 = vector.broadcast %29 : vector<8x1xf32> to vector<8x128xf32>
      %31 = arith.mulf %22, %30 : vector<8x128xf32>
      %c0_22 = arith.constant 0 : index
      %c0_23 = arith.constant 0 : index
      %32 = vector.load %arg7[%c0_22, %c0_23] : memref<8x128xf32, #tpu.memory_space<vmem>>, vector<8x128xf32>
      tpu.vector_store %arg7[%c0_22, %c0_23], %31 {strides = array<i32>} : memref<8x128xf32, #tpu.memory_space<vmem>>, vector<8x128xf32>,
    } else {
    }
    return
  }
  func.func @transform_0(%arg0: i32, %arg1: i32) -> (i32, i32) {
    %c0_i32 = arith.constant 0 : i32
    return %arg0, %arg1 : i32, i32
  }
  func.func @transform_1(%arg0: i32, %arg1: i32) -> (i32, i32) {
    %c0_i32 = arith.constant 0 : i32
    %c0_i32_0 = arith.constant 0 : i32
    return %arg1, %c0_i32 : i32, i32
  }
  func.func @transform_2(%arg0: i32, %arg1: i32) -> (i32, i32) {
    %c0_i32 = arith.constant 0 : i32
    %c0_i32_0 = arith.constant 0 : i32
    %c0_i32_1 = arith.constant 0 : i32
    return %c0_i32, %c0_i32_0 : i32, i32
  }
  func.func @transform_3(%arg0: i32, %arg1: i32) -> (i32, i32) {
    %c0_i32 = arith.constant 0 : i32
    %c0_i32_0 = arith.constant 0 : i32
    %c0_i32_1 = arith.constant 0 : i32
    return %c0_i32, %c0_i32_0 : i32, i32
  }
  func.func @transform_4(%arg0: i32, %arg1: i32) -> (i32, i32) {
    %c0_i32 = arith.constant 0 : i32
    %c0_i32_0 = arith.constant 0 : i32
    %c0_i32_1 = arith.constant 0 : i32
    return %c0_i32, %c0_i32_0 : i32, i32
  }
  func.func @transform_5(%arg0: i32, %arg1: i32) -> (i32, i32) {
    %c0_i32 = arith.constant 0 : i32
    %c0_i32_0 = arith.constant 0 : i32
    return %arg0, %c0_i32 : i32, i32
  }
}

</mosaic_0001>

<bundles_post_ra>
// kernel: tpu_custom_call.1
= control target key start
LH: loop header
LB: loop body
LE: loop exit
PB: predicated region body
PF: predicated region fallthrough
CT: control target
= control target key end

     0   :  { %10 = vsyncpa [#allocation4], 0  ;;  %s372_s0 = inlined_call_operand.hbm [shape: f32[8,32], index: 0, kind: input, shape index: {}]   ;;  %s373_s1 = inlined_call_operand.hbm [shape: f32[32,128], index: 1, kind: input, shape index: {}]   ;;  %s374_s2 = inlined_call_operand.vmem [shape: f32[1,128], index: 2, kind: input, shape index: {}]   ;;  %s375_s3 = inlined_call_operand.hbm [shape: f32[128,128], index: 3, kind: input, shape index: {}]   ;;  %s376_s4 = inlined_call_operand.vmem [shape: f32[1,128], index: 4, kind: input, shape index: {}]   ;;  %s377_s5 = inlined_call_operand.hbm [shape: f32[8,128], index: 5, kind: output, shape index: {}]  }
   0x1   :  { %11 = vsyncpa [#allocation7], 0  ;;  %s28_s20 = sshll.u32 %s373_s1, 4  ;;  %s29_s20 = int_to_ptr.hbm [resolvable:$true] %s28_s20 }
   0x2   :  { %12 = vsyncpa [#allocation5], 0  ;;  %s318_s21 = smov [#allocation6]   ;;  %s18_s25 = sshll.u32 %s372_s0, 4  ;;  %s19_s25 = int_to_ptr.hbm [resolvable:$true] %s18_s25 }
   0x3   :  { %s30_s22 = sshll.u32 %s318_s21, 4  ;;  %s319_s26 = smov 128   ;;  %s31_s22 = int_to_ptr.vmem [resolvable:$true] %s30_s22 }
   0x4   :  { %s320_s27 = smov 8   ;;  %s321_s28 = smov [#allocation3]  }
   0x5   :  { %36 = dma.hbm_to_vmem [thread:$0]  %s29_s20, 512, %s31_s22, [#allocation7], %s319_s26, %s319_s26, %s320_s27  }
   0x6   :  { %s20_s29 = sshll.u32 %s321_s28, 4  ;;  %s43_s7 = sshll.u32 %s375_s3, 4  ;;  %s21_s29 = int_to_ptr.vmem [resolvable:$true] %s20_s29  ;;  %s44_s7 = int_to_ptr.hbm [resolvable:$true] %s43_s7 }
   0x7   :  { %23 = dma.hbm_to_vmem [thread:$0]  %s19_s25, 128, %s21_s29, [#allocation4]  }
   0x8   :  { %s322_s1 = smov [#allocation8]  }
   0x9   :  { %s45_s8 = sshll.u32 %s322_s1, 4  ;;  %s46_s8 = int_to_ptr.vmem [resolvable:$true] %s45_s8 }
   0xa   :  { %51 = dma.hbm_to_vmem [thread:$0]  %s44_s7, 2048, %s46_s8, [#allocation7], %s319_s26, %s319_s26, %s320_s27  }
   0xb   :  { %312 = dma.done.wait [#allocation4], 128  }
   0xc   :  { %313 = vsyncadd [#allocation4], 4294967168 }
   0xd   :  { %314 = dma.done.wait [#allocation7], 2560  }
   0xe   :  { %315 = vsyncadd [#allocation7], 4294964736  ;;  %v76_v0 = vld [vmem:[#allocation6 + $0x18] sm:$0xff]  ;;  %v75_v1 = vld [vmem:[#allocation6 + $0x10] sm:$0xff]  ;;  %vm77_vm0 = vcmask 261120   ;;  %s192_s13 = sshll.u32 %s377_s5, 4  ;;  %s193_s13 = int_to_ptr.hbm [resolvable:$true] %s192_s13 }
   0xf   :  { %93 = vmatpush.msra.mxu0 %v76_v0  ;;  %v128_v2 = vld [vmem:[#allocation8 + $0x78] sm:$0xff]  ;;  %v74_v3 = vld [vmem:[#allocation6 + $0x8] sm:$0xff]  ;;  %v127_v4 = vld [vmem:[#allocation8 + $0x70] sm:$0xff] }
  0x10   :  { %133 = vmatpush.msra.mxu1 %v128_v2  ;;  %v126_v5 = vld [vmem:[#allocation8 + $0x68] sm:$0xff]  ;;  %v73_v6 = vld [vmem:[#allocation6] sm:$0xff]  ;;  %v72_v7 = vld [vmem:[#allocation3] sm:$0xff] }
  0x11   :  { %94 = vmatpush.msra.mxu0 %v75_v1  ;;  %v125_v8 = vld [vmem:[#allocation8 + $0x60] sm:$0xff]  ;;  %v124_v9 = vld [vmem:[#allocation8 + $0x58] sm:$0xff]  ;;  %v123_v10 = vld [vmem:[#allocation8 + $0x50] sm:$0xff] }
  0x12   :  { %134 = vmatpush.msra.mxu1 %v127_v4  ;;  %v122_v11 = vld [vmem:[#allocation8 + $0x48] sm:$0xff]  ;;  %v121_v12 = vld [vmem:[#allocation8 + $0x40] sm:$0xff]  ;;  %v120_v13 = vld [vmem:[#allocation8 + $0x38] sm:$0xff] }
  0x13   :  { %95 = vmatpush.msra.mxu0 %v74_v3  ;;  %v119_v14 = vld [vmem:[#allocation8 + $0x30] sm:$0xff]  ;;  %v118_v15 = vld [vmem:[#allocation8 + $0x28] sm:$0xff]  ;;  %v117_v16 = vld [vmem:[#allocation8 + $0x20] sm:$0xff] }
  0x14   :  { %135 = vmatpush.msra.mxu1 %v126_v5  ;;  %v116_v17 = vld [vmem:[#allocation8 + $0x18] sm:$0xff]  ;;  %v115_v18 = vld [vmem:[#allocation8 + $0x10] sm:$0xff]  ;;  %v114_v19 = vld [vmem:[#allocation8 + $0x8] sm:$0xff] }
  0x15   :  { %96 = vmatpush.msra.mxu0 %v73_v6  ;;  %v113_v20 = vld [vmem:[#allocation8] sm:$0xff]  ;;  %v210_v21 = vld [vmem:[%s374_s2] ss:$0 sm:$0xff]  ;;  %s323_s2 = smov [#allocation9]  }
  0x16   :  { %203 = vmatmul.msk.f32.vlgmr.msra.gmra.mxu0 %vm77_vm0, %v72_v7  ;;  %136 = vmatpush.msra.mxu1 %v125_v8  ;;  %v211_v25 = vld [vmem:[%s376_s4] ss:$0 sm:$0xff]  ;;  %s190_s4 = sshll.u32 %s323_s2, 4  ;;  %s191_s4 = int_to_ptr.vmem [resolvable:$true] %s190_s4 }
  0x18   :  { %137 = vmatpush.msra.mxu1 %v124_v9 }
  0x1a   :  { %138 = vmatpush.msra.mxu1 %v123_v10 }
  0x1c   :  { %139 = vmatpush.msra.mxu1 %v122_v11 }
  0x1e   :  { %140 = vmatpush.msra.mxu1 %v121_v12 }
  0x20   :  { %141 = vmatpush.msra.mxu1 %v120_v13 }
  0x22   :  { %142 = vmatpush.msra.mxu1 %v119_v14 }
  0x24   :  { %143 = vmatpush.msra.mxu1 %v118_v15 }
  0x26   :  { %144 = vmatpush.msra.mxu1 %v117_v16 }
  0x28   :  { %145 = vmatpush.msra.mxu1 %v116_v17 }
  0x2a   :  { %146 = vmatpush.msra.mxu1 %v115_v18 }
  0x2c   :  { %147 = vmatpush.msra.mxu1 %v114_v19 }
  0x2e   :  { %148 = vmatpush.msra.mxu1 %v113_v20 }
  0x93   :  { %v98_v22 = vpop.f32.mrf.mxu0 }
  0x94   :  { %v111_v23 = vadd.f32 %v210_v21, %v98_v22 }
  0x96   :  { %v112_v24 = vmax.f32 %v111_v23, 0.0 }
  0x98   :  { %149 = vmatmul.f32.vlgmr.msra.gmra.mxu1 %v112_v24 }
 0x115   :  { %v150_v26 = vpop.f32.mrf.mxu1 }
 0x116   :  { %v151_v27 = vadd.f32 %v211_v25, %v150_v26 }
 0x118   :  { %v153_v28 = vmul.f32 %v151_v27, %v151_v27 }
 0x11a   :  { %154 = vadd.xlane.f32.xlu0 %v153_v28 }
 0x18d   :  { %v155_v29 = vpop.xlane.xlu0 %154 }
 0x18e   :  { %212 = vrsqrt.f32 %v155_v29  ;;  %vm163_vm1 = vcmp.eq.f32.partialorder %v155_v29, inf  ;;  %v166_v37 = vand.u32 2147483648, %v155_v29  ;;  %vm165_vm2 = vcmp.eq.f32.partialorder %v155_v29, 0.0 }
 0x194   :  { %v213_v30 = vpop.eup %212 }
 0x195   :  { %v157_v31 = vmul.f32 %v213_v30, %v155_v29 }
 0x197   :  { %v158_v32 = vmul.f32 %v213_v30, %v157_v31 }
 0x199   :  { %v159_v33 = vmul.f32 0.5, %v158_v32 }
 0x19b   :  { %v160_v34 = vsub.f32 1.5, %v159_v33 }
 0x19d   :  { %v161_v35 = vmul.f32 %v213_v30, %v160_v34 }
 0x19f   :  { %v162_v36 = vmul.f32 %v161_v35, %v155_v29 }
 0x1a1   :  { %v164_v38 = vsel %vm163_vm1, %v155_v29, %v162_v36 }
 0x1a2   :  { %v167_v39 = vsel %vm165_vm2, %v166_v37, %v164_v38 }
 0x1a3   :  { %v168_v40 = vmax.f32 %v167_v39, 1e-12 }
 0x1a5   :  { %214 = vrcp.f32 %v168_v40  ;;  %v180_v44 = vand.u32 2147483648, %v168_v40  ;;  %v178_v46 = vand.u32 2147483647, %v168_v40  ;;  %vm174_vm4 = vweird.f32 %v168_v40 }
 0x1a7   :  { %v181_v48 = vor.u32 1.1754944e-38, %v180_v44  ;;  %vm179_vm6 = vcmp.eq.f32.partialorder %v178_v46, 8.507059e+37 }
 0x1ab   :  { %v215_v41 = vpop.eup %214 }
 0x1ac   :  { %v170_v42 = vmul.f32 %v215_v41, %v168_v40  ;;  %vm175_vm3 = vweird.f32 %v215_v41 }
 0x1ad   :  { %vm176_vm5 = vmor %vm174_vm4, %vm175_vm3 }
 0x1ae   :  { %v171_v43 = vsub.f32 1.0, %v170_v42 }
 0x1b0   :  { %v172_v45 = vmul.f32 %v215_v41, %v171_v43 }
 0x1b2   :  { %v173_v47 = vadd.f32 %v215_v41, %v172_v45 }
 0x1b4   :  { %v177_v49 = vsel %vm176_vm5, %v215_v41, %v173_v47 }
 0x1b5   :  { %v182_v50 = vsel %vm179_vm6, %v181_v48, %v177_v49 }
 0x1b6   :  { %v183_v51 = vmul.f32 %v182_v50, %v151_v27 }
 0x1b8   :  { %184 = vst [vmem:[#allocation9] sm:$0xff] %v183_v51 }
 0x1b9   :  { %195 = dma.vmem_to_hbm [thread:$0]  %s191_s4, 128, %s193_s13, [#allocation5]  }
 0x1ba   :  { %316 = dma.done.wait [#allocation5], 128  }
 0x1bb   :  { %317 = vsyncadd [#allocation5], 4294967168 }
 0x1bc   :  { %200 = vsyncpa [#allocation4], 1 }
 0x1bd   :  { %201 = vsyncpa [#allocation7], 1 }
 0x1be   :  { %202 = vsyncpa [#allocation5], 1 }

// kernel: tpu_custom_call.1
= control target key start
LH: loop header
LB: loop body
LE: loop exit
PB: predicated region body
PF: predicated region fallthrough
CT: control target
= control target key end

     0   :  { %10 = vsyncpa [#allocation4], 0  ;;  %s372_s0 = inlined_call_operand.hbm [shape: f32[8,32], index: 0, kind: input, shape index: {}]   ;;  %s373_s1 = inlined_call_operand.hbm [shape: f32[32,128], index: 1, kind: input, shape index: {}]   ;;  %s374_s2 = inlined_call_operand.vmem [shape: f32[1,128], index: 2, kind: input, shape index: {}]   ;;  %s375_s3 = inlined_call_operand.hbm [shape: f32[128,128], index: 3, kind: input, shape index: {}]   ;;  %s376_s4 = inlined_call_operand.vmem [shape: f32[1,128], index: 4, kind: input, shape index: {}]   ;;  %s377_s5 = inlined_call_operand.hbm [shape: f32[8,128], index: 5, kind: output, shape index: {}]  }
   0x1   :  { %11 = vsyncpa [#allocation7], 0  ;;  %s28_s20 = sshll.u32 %s373_s1, 4  ;;  %s29_s20 = int_to_ptr.hbm [resolvable:$true] %s28_s20 }
   0x2   :  { %12 = vsyncpa [#allocation5], 0  ;;  %s318_s21 = smov [#allocation6]   ;;  %s18_s25 = sshll.u32 %s372_s0, 4  ;;  %s19_s25 = int_to_ptr.hbm [resolvable:$true] %s18_s25 }
   0x3   :  { %s30_s22 = sshll.u32 %s318_s21, 4  ;;  %s319_s26 = smov 128   ;;  %s31_s22 = int_to_ptr.vmem [resolvable:$true] %s30_s22 }
   0x4   :  { %s320_s27 = smov 8   ;;  %s321_s28 = smov [#allocation3]  }
   0x5   :  { %36 = dma.hbm_to_vmem [thread:$0]  %s29_s20, 512, %s31_s22, [#allocation7], %s319_s26, %s319_s26, %s320_s27  }
   0x6   :  { %s20_s29 = sshll.u32 %s321_s28, 4  ;;  %s43_s7 = sshll.u32 %s375_s3, 4  ;;  %s21_s29 = int_to_ptr.vmem [resolvable:$true] %s20_s29  ;;  %s44_s7 = int_to_ptr.hbm [resolvable:$true] %s43_s7 }
   0x7   :  { %23 = dma.hbm_to_vmem [thread:$0]  %s19_s25, 128, %s21_s29, [#allocation4]  }
   0x8   :  { %s322_s1 = smov [#allocation8]  }
   0x9   :  { %s45_s8 = sshll.u32 %s322_s1, 4  ;;  %s46_s8 = int_to_ptr.vmem [resolvable:$true] %s45_s8 }
   0xa   :  { %51 = dma.hbm_to_vmem [thread:$0]  %s44_s7, 2048, %s46_s8, [#allocation7], %s319_s26, %s319_s26, %s320_s27  }
   0xb   :  { %312 = dma.done.wait [#allocation4], 128  }
   0xc   :  { %313 = vsyncadd [#allocation4], 4294967168 }
   0xd   :  { %314 = dma.done.wait [#allocation7], 2560  }
   0xe   :  { %315 = vsyncadd [#allocation7], 4294964736  ;;  %v76_v0 = vld [vmem:[#allocation6 + $0x18] sm:$0xff]  ;;  %v75_v1 = vld [vmem:[#allocation6 + $0x10] sm:$0xff]  ;;  %vm77_vm0 = vcmask 261120   ;;  %s192_s13 = sshll.u32 %s377_s5, 4  ;;  %s193_s13 = int_to_ptr.hbm [resolvable:$true] %s192_s13 }
   0xf   :  { %93 = vmatpush.msra.mxu0 %v76_v0  ;;  %v128_v2 = vld [vmem:[#allocation8 + $0x78] sm:$0xff]  ;;  %v74_v3 = vld [vmem:[#allocation6 + $0x8] sm:$0xff]  ;;  %v127_v4 = vld [vmem:[#allocation8 + $0x70] sm:$0xff] }
  0x10   :  { %133 = vmatpush.msra.mxu1 %v128_v2  ;;  %v126_v5 = vld [vmem:[#allocation8 + $0x68] sm:$0xff]  ;;  %v73_v6 = vld [vmem:[#allocation6] sm:$0xff]  ;;  %v72_v7 = vld [vmem:[#allocation3] sm:$0xff] }
  0x11   :  { %94 = vmatpush.msra.mxu0 %v75_v1  ;;  %v125_v8 = vld [vmem:[#allocation8 + $0x60] sm:$0xff]  ;;  %v124_v9 = vld [vmem:[#allocation8 + $0x58] sm:$0xff]  ;;  %v123_v10 = vld [vmem:[#allocation8 + $0x50] sm:$0xff] }
  0x12   :  { %134 = vmatpush.msra.mxu1 %v127_v4  ;;  %v122_v11 = vld [vmem:[#allocation8 + $0x48] sm:$0xff]  ;;  %v121_v12 = vld [vmem:[#allocation8 + $0x40] sm:$0xff]  ;;  %v120_v13 = vld [vmem:[#allocation8 + $0x38] sm:$0xff] }
  0x13   :  { %95 = vmatpush.msra.mxu0 %v74_v3  ;;  %v119_v14 = vld [vmem:[#allocation8 + $0x30] sm:$0xff]  ;;  %v118_v15 = vld [vmem:[#allocation8 + $0x28] sm:$0xff]  ;;  %v117_v16 = vld [vmem:[#allocation8 + $0x20] sm:$0xff] }
  0x14   :  { %135 = vmatpush.msra.mxu1 %v126_v5  ;;  %v116_v17 = vld [vmem:[#allocation8 + $0x18] sm:$0xff]  ;;  %v115_v18 = vld [vmem:[#allocation8 + $0x10] sm:$0xff]  ;;  %v114_v19 = vld [vmem:[#allocation8 + $0x8] sm:$0xff] }
  0x15   :  { %96 = vmatpush.msra.mxu0 %v73_v6  ;;  %v113_v20 = vld [vmem:[#allocation8] sm:$0xff]  ;;  %v210_v21 = vld [vmem:[%s374_s2] ss:$0 sm:$0xff]  ;;  %s323_s2 = smov [#allocation9]  }
  0x16   :  { %203 = vmatmul.msk.f32.vlgmr.msra.gmra.mxu0 %vm77_vm0, %v72_v7  ;;  %136 = vmatpush.msra.mxu1 %v125_v8  ;;  %v211_v25 = vld [vmem:[%s376_s4] ss:$0 sm:$0xff]  ;;  %s190_s4 = sshll.u32 %s323_s2, 4  ;;  %s191_s4 = int_to_ptr.vmem [resolvable:$true] %s190_s4 }
  0x18   :  { %137 = vmatpush.msra.mxu1 %v124_v9 }
  0x1a   :  { %138 = vmatpush.msra.mxu1 %v123_v10 }
  0x1c   :  { %139 = vmatpush.msra.mxu1 %v122_v11 }
  0x1e   :  { %140 = vmatpush.msra.mxu1 %v121_v12 }
  0x20   :  { %141 = vmatpush.msra.mxu1 %v120_v13 }
  0x22   :  { %142 = vmatpush.msra.mxu1 %v119_v14 }
  0x24   :  { %143 = vmatpush.msra.mxu1 %v118_v15 }
  0x26   :  { %144 = vmatpush.msra.mxu1 %v117_v16 }
  0x28   :  { %145 = vmatpush.msra.mxu1 %v116_v17 }
  0x2a   :  { %146 = vmatpush.msra.mxu1 %v115_v18 }
  0x2c   :  { %147 = vmatpush.msra.mxu1 %v114_v19 }
  0x2e   :  { %148 = vmatpush.msra.mxu1 %v113_v20 }
  0x93   :  { %v98_v22 = vpop.f32.mrf.mxu0 }
  0x94   :  { %v111_v23 = vadd.f32 %v210_v21, %v98_v22 }
  0x96   :  { %v112_v24 = vmax.f32 %v111_v23, 0.0 }
  0x98   :  { %149 = vmatmul.f32.vlgmr.msra.gmra.mxu1 %v112_v24 }
 0x115   :  { %v150_v26 = vpop.f32.mrf.mxu1 }
 0x116   :  { %v151_v27 = vadd.f32 %v211_v25, %v150_v26 }
 0x118   :  { %v153_v28 = vmul.f32 %v151_v27, %v151_v27 }
 0x11a   :  { %154 = vadd.xlane.f32.xlu0 %v153_v28 }
 0x18d   :  { %v155_v29 = vpop.xlane.xlu0 %154 }
 0x18e   :  { %212 = vrsqrt.f32 %v155_v29  ;;  %vm163_vm1 = vcmp.eq.f32.partialorder %v155_v29, inf  ;;  %v166_v37 = vand.u32 2147483648, %v155_v29  ;;  %vm165_vm2 = vcmp.eq.f32.partialorder %v155_v29, 0.0 }
 0x194   :  { %v213_v30 = vpop.eup %212 }
 0x195   :  { %v157_v31 = vmul.f32 %v213_v30, %v155_v29 }
 0x197   :  { %v158_v32 = vmul.f32 %v213_v30, %v157_v31 }
 0x199   :  { %v159_v33 = vmul.f32 0.5, %v158_v32 }
 0x19b   :  { %v160_v34 = vsub.f32 1.5, %v159_v33 }
 0x19d   :  { %v161_v35 = vmul.f32 %v213_v30, %v160_v34 }
 0x19f   :  { %v162_v36 = vmul.f32 %v161_v35, %v155_v29 }
 0x1a1   :  { %v164_v38 = vsel %vm163_vm1, %v155_v29, %v162_v36 }
 0x1a2   :  { %v167_v39 = vsel %vm165_vm2, %v166_v37, %v164_v38 }
 0x1a3   :  { %v168_v40 = vmax.f32 %v167_v39, 1e-12 }
 0x1a5   :  { %214 = vrcp.f32 %v168_v40  ;;  %v180_v44 = vand.u32 2147483648, %v168_v40  ;;  %v178_v46 = vand.u32 2147483647, %v168_v40  ;;  %vm174_vm4 = vweird.f32 %v168_v40 }
 0x1a7   :  { %v181_v48 = vor.u32 1.1754944e-38, %v180_v44  ;;  %vm179_vm6 = vcmp.eq.f32.partialorder %v178_v46, 8.507059e+37 }
 0x1ab   :  { %v215_v41 = vpop.eup %214 }
 0x1ac   :  { %v170_v42 = vmul.f32 %v215_v41, %v168_v40  ;;  %vm175_vm3 = vweird.f32 %v215_v41 }
 0x1ad   :  { %vm176_vm5 = vmor %vm174_vm4, %vm175_vm3 }
 0x1ae   :  { %v171_v43 = vsub.f32 1.0, %v170_v42 }
 0x1b0   :  { %v172_v45 = vmul.f32 %v215_v41, %v171_v43 }
 0x1b2   :  { %v173_v47 = vadd.f32 %v215_v41, %v172_v45 }
 0x1b4   :  { %v177_v49 = vsel %vm176_vm5, %v215_v41, %v173_v47 }
 0x1b5   :  { %v182_v50 = vsel %vm179_vm6, %v181_v48, %v177_v49 }
 0x1b6   :  { %v183_v51 = vmul.f32 %v182_v50, %v151_v27 }
 0x1b8   :  { %184 = vst [vmem:[#allocation9] sm:$0xff] %v183_v51 }
 0x1b9   :  { %195 = dma.vmem_to_hbm [thread:$0]  %s191_s4, 128, %s193_s13, [#allocation5]  }
 0x1ba   :  { %316 = dma.done.wait [#allocation5], 128  }
 0x1bb   :  { %317 = vsyncadd [#allocation5], 4294967168 }
 0x1bc   :  { %200 = vsyncpa [#allocation4], 1 }
 0x1bd   :  { %201 = vsyncpa [#allocation7], 1 }
 0x1be   :  { %202 = vsyncpa [#allocation5], 1 }

</bundles_post_ra>
